<compile_context>
chip_gen: v7x
topology: tpu7x:2x2x1
jax: 0.10.0
libtpu: 0.0.40
codegen_flags: <defaults>
</compile_context>

<pallas_src>
import jax
import jax.numpy as jnp
from jax.experimental import pallas as pl
from jax.experimental.pallas import tpu as pltpu

SELU_ALPHA = 1.6732632423543772
SELU_SCALE = 1.0507009873554805

_LANE = 128
_SUBLANE = 8
_VMEM_BUDGET = 24 * 1024 * 1024      # working-set target (fits v5e default scoped)
_VMEM_LIMIT = 32 * 1024 * 1024       # explicit scoped limit, safe on v5e/v6e/v7x


def _round_up(x, m):
    return ((x + m - 1) // m) * m


def _selu(x):
    # SELU(x) = scale * (max(0,x) + min(0, alpha*(exp(x)-1)))  -- fp32 VPU/EUP
    return SELU_SCALE * jnp.where(x > 0, x, SELU_ALPHA * (jnp.exp(x) - 1.0))


# ----------------------------- kernels ------------------------------------


def _encoder2_kernel(x_ref, w1_ref, b1_ref, w2_ref, b2_ref, o_ref):
    # Linear 1 on the MXU: bf16 operands, fp32 accumulation.
    h = jnp.dot(x_ref[...], w1_ref[...], preferred_element_type=jnp.float32)
    h = h + b1_ref[...]                      # fp32 bias add
    h = _selu(h)                             # fp32 SELU
    # Dropout(p=0.0) is the identity.
    # TODO(synk): training-mode dropout (p>0) would need pltpu.prng_random_bits masking.
    h = jnp.dot(h.astype(jnp.bfloat16), w2_ref[...],
                preferred_element_type=jnp.float32)
    h = h + b2_ref[...]
    o_ref[...] = h.astype(o_ref.dtype)


def _encoder1_kernel(x_ref, w1_ref, b1_ref, o_ref):
    h = jnp.dot(x_ref[...], w1_ref[...], preferred_element_type=jnp.float32)
    o_ref[...] = (h + b1_ref[...]).astype(o_ref.dtype)


# ----------------------------- wrapper -------------------------------------


def prepare_encoder_params(params, *, n_layers):
    """One-time weight preparation (hoist out of the per-call path):
      * transpose PyTorch (out, in) weights to (in, out),
      * zero-pad in/out dims up to multiples of 128 (lane-dense tiles),
      * cast matmul operands to bf16 (fp32 accumulation happens in-kernel),
      * biases stay fp32, shaped (1, emb_pad)."""
    if n_layers == 0:
        return None
    emb_dim, img_dim = params["w1"].shape
    kp = _round_up(img_dim, _LANE)
    ep = _round_up(emb_dim, _LANE)

    w1t = jnp.pad(params["w1"].T, ((0, kp - img_dim), (0, ep - emb_dim)))
    b1 = jnp.pad(params["b1"], (0, ep - emb_dim)).reshape(1, ep)
    prep = {
        "w1t": w1t.astype(jnp.bfloat16),
        "b1": b1.astype(jnp.float32),
        "img_dim": img_dim, "emb_dim": emb_dim,
        "img_pad": kp, "emb_pad": ep,
    }
    if n_layers >= 2:
        w2t = jnp.pad(params["w2"].T, ((0, ep - emb_dim), (0, ep - emb_dim)))
        b2 = jnp.pad(params["b2"], (0, ep - emb_dim)).reshape(1, ep)
        prep["w2t"] = w2t.astype(jnp.bfloat16)
        prep["b2"] = b2.astype(jnp.float32)
    return prep


def image_encoder_forward(image, prep, *, n_layers):
    """Forward pass of ImageEncoder.

    image: (B, img_dim) float32
    prep:  output of prepare_encoder_params (None for n_layers == 0)."""
    if n_layers == 0:
        return image

    B, img_dim = image.shape
    assert img_dim == prep["img_dim"]
    kp, ep = prep["img_pad"], prep["emb_pad"]
    emb_dim = prep["emb_dim"]
    two_layers = n_layers >= 2

    # ---- batch tile: sublane-aligned, VMEM-budgeted ----
    tb = min(256, _round_up(B, _SUBLANE))

    def vmem_est(t):
        est = 2 * t * kp * 2 + 2 * t * ep * 4          # double-buffered x / out
        est += kp * ep * 2 + ep * 4                    # resident w1t + b1
        if two_layers:
            est += ep * ep * 2 + ep * 4                # resident w2t + b2
        return est

    while tb > _SUBLANE and vmem_est(tb) > _VMEM_BUDGET:
        tb //= 2
    tb = max(_round_up(tb, _SUBLANE), _SUBLANE)
    b_pad = _round_up(B, tb)
    num_tiles = b_pad // tb

    # x tile in bf16 (halves DMA bytes); zero-pad batch and feature dims.
    x = jnp.pad(image.astype(jnp.bfloat16),
                ((0, b_pad - B), (0, kp - img_dim)))

    flops = 2 * b_pad * kp * ep + (2 * b_pad * ep * ep if two_layers else 0)
    transcendentals = b_pad * ep if two_layers else 0
    bytes_accessed = (x.size * 2 + b_pad * ep * 4
                      + prep["w1t"].size * 2 + prep["b1"].size * 4
                      + ((prep["w2t"].size * 2 + prep["b2"].size * 4)
                         if two_layers else 0))

    def resident(shape):
        # Constant block index -> DMA'd once, stays in VMEM across grid steps.
        return pl.BlockSpec(shape, lambda i: (0, 0))

    in_specs = [pl.BlockSpec((tb, kp), lambda i: (i, 0)),
                resident((kp, ep)),
                resident((1, ep))]
    args = [x, prep["w1t"], prep["b1"]]
    if two_layers:
        in_specs += [resident((ep, ep)), resident((1, ep))]
        args += [prep["w2t"], prep["b2"]]
        kernel = _encoder2_kernel
    else:
        kernel = _encoder1_kernel

    out = pl.pallas_call(
        kernel,
        out_shape=jax.ShapeDtypeStruct((b_pad, ep), jnp.float32),
        grid=(num_tiles,),
        in_specs=in_specs,
        out_specs=pl.BlockSpec((tb, ep), lambda i: (i, 0)),
        compiler_params=pltpu.CompilerParams(
            dimension_semantics=("parallel",),
            vmem_limit_bytes=_VMEM_LIMIT),
        cost_estimate=pl.CostEstimate(
            flops=flops,
            transcendentals=transcendentals,
            bytes_accessed=bytes_accessed),
    )(*args)

    return out[:B, :emb_dim].astype(image.dtype)


# ----------------------------- references ----------------------------------


def _reference_forward_fp32(image, params, *, n_layers):
    # Exact PyTorch-module semantics in fp32.
    if n_layers == 0:
        return image
    x = image @ params["w1"].T + params["b1"]
    if n_layers == 1:
        return x
    x = _selu(x)
    x = x @ params["w2"].T + params["b2"]
    return x


def _reference_forward_bf16(image, params, *, n_layers):
    # Mirrors the kernel math: bf16 matmul operands, fp32 accumulation,
    # fp32 bias adds / SELU.
    if n_layers == 0:
        return image
    x = jnp.dot(image.astype(jnp.bfloat16),
                params["w1"].T.astype(jnp.bfloat16),
                preferred_element_type=jnp.float32) + params["b1"]
    if n_layers == 1:
        return x
    x = _selu(x)
    x = jnp.dot(x.astype(jnp.bfloat16),
                params["w2"].T.astype(jnp.bfloat16),
                preferred_element_type=jnp.float32) + params["b2"]
    return x


def _init_params(key, img_dim, emb_dim):
    # Deterministic synthetic init (Kaiming-uniform-ish bounds like nn.Linear).
    k1, k2, k3, k4 = jax.random.split(key, 4)
    lim1 = 1.0 / jnp.sqrt(img_dim)
    lim2 = 1.0 / jnp.sqrt(emb_dim)
    return {
        "w1": jax.random.uniform(k1, (emb_dim, img_dim), jnp.float32, -lim1, lim1),
        "b1": jax.random.uniform(k2, (emb_dim,), jnp.float32, -lim1, lim1),
        "w2": jax.random.uniform(k3, (emb_dim, emb_dim), jnp.float32, -lim2, lim2),
        "b2": jax.random.uniform(k4, (emb_dim,), jnp.float32, -lim2, lim2),
    }


if __name__ == "__main__":
    key = jax.random.PRNGKey(0)
    kx, kp = jax.random.split(key)

    B, img_dim, emb_dim = 8, 64, 32
    image = jax.random.normal(kx, (B, img_dim), jnp.float32)
    params = _init_params(kp, img_dim, emb_dim)

    # --- n_layers == 2 (Linear -> SELU -> Dropout(0) -> Linear) ---
    prep2 = prepare_encoder_params(params, n_layers=2)
    out2 = jax.block_until_ready(image_encoder_forward(image, prep2, n_layers=2))
    assert out2.shape == (B, emb_dim), out2.shape
    ref2_k = _reference_forward_bf16(image, params, n_layers=2)
    ref2_f = _reference_forward_fp32(image, params, n_layers=2)
    assert jnp.allclose(out2, ref2_k, atol=1e-3, rtol=1e-3), \
        float(jnp.max(jnp.abs(out2 - ref2_k)))
    assert jnp.allclose(out2, ref2_f, atol=5e-2, rtol=5e-2), \
        float(jnp.max(jnp.abs(out2 - ref2_f)))

    # --- n_layers == 1 (single Linear) ---
    prep1 = prepare_encoder_params(params, n_layers=1)
    out1 = jax.block_until_ready(image_encoder_forward(image, prep1, n_layers=1))
    assert out1.shape == (B, emb_dim), out1.shape
    ref1_k = _reference_forward_bf16(image, params, n_layers=1)
    assert jnp.allclose(out1, ref1_k, atol=1e-3, rtol=1e-3), \
        float(jnp.max(jnp.abs(out1 - ref1_k)))

    # --- n_layers == 0 (identity) ---
    out0 = image_encoder_forward(image, None, n_layers=0)
    assert jnp.array_equal(out0, image)

    print("KERNEL_OK")
</pallas_src>

<mosaic_0001>
module attributes {stable_mosaic.version = 11 : i64} {
  func.func @_encoder2_kernel(%arg0: i32, %arg1: memref<8x128xbf16, #tpu.memory_space<vmem>>, %arg2: memref<128x128xbf16, #tpu.memory_space<vmem>>, %arg3: memref<1x128xf32, #tpu.memory_space<vmem>>, %arg4: memref<128x128xbf16, #tpu.memory_space<vmem>>, %arg5: memref<1x128xf32, #tpu.memory_space<vmem>>, %arg6: memref<8x128xf32, #tpu.memory_space<vmem>>) attributes {dimension_semantics = [#tpu.dimension_semantics<parallel>], iteration_bounds = array<i64: 1>, scalar_prefetch = 0 : i64, scratch_operands = 0 : i64, tpu.core_type = #tpu.core_type<tc>, window_params = [{transform_indices = @transform_0, window_bounds = array<i64: 8, 128>}, {pipeline_mode = #tpu.pipeline_mode<synchronous>, transform_indices = @transform_1, window_bounds = array<i64: 128, 128>}, {pipeline_mode = #tpu.pipeline_mode<synchronous>, transform_indices = @transform_2, window_bounds = array<i64: 1, 128>}, {pipeline_mode = #tpu.pipeline_mode<synchronous>, transform_indices = @transform_3, window_bounds = array<i64: 128, 128>}, {pipeline_mode = #tpu.pipeline_mode<synchronous>, transform_indices = @transform_4, window_bounds = array<i64: 1, 128>}, {transform_indices = @transform_5, window_bounds = array<i64: 8, 128>}]} {
    %c0 = arith.constant 0 : index
    %c0_0 = arith.constant 0 : index
    %0 = vector.load %arg1[%c0, %c0_0] : memref<8x128xbf16, #tpu.memory_space<vmem>>, vector<8x128xbf16>
    %c0_1 = arith.constant 0 : index
    %c0_2 = arith.constant 0 : index
    %1 = vector.load %arg2[%c0_1, %c0_2] : memref<128x128xbf16, #tpu.memory_space<vmem>>, vector<128x128xbf16>
    %cst = arith.constant dense<0.000000e+00> : vector<8x128xf32>
    %2 = tpu.matmul %0, %1, %cst {dimension_numbers = #tpu.dot_dimension_numbers<[1], [0], [0], [1], [0, 0, 1, 1], [], []>} : vector<8x128xbf16>, vector<128x128xbf16>, vector<8x128xf32> -> vector<8x128xf32>
    %c0_3 = arith.constant 0 : index
    %c0_4 = arith.constant 0 : index
    %3 = vector.load %arg3[%c0_3, %c0_4] : memref<1x128xf32, #tpu.memory_space<vmem>>, vector<1x128xf32>
    %4 = vector.broadcast %3 : vector<1x128xf32> to vector<8x128xf32>
    %5 = arith.addf %2, %4 : vector<8x128xf32>
    %cst_5 = arith.constant 0.000000e+00 : f32
    %6 = vector.broadcast %cst_5 : f32 to vector<8x128xf32>
    %7 = arith.cmpf ogt, %5, %6 : vector<8x128xf32>
    %8 = math.exp %5 : vector<8x128xf32>
    %cst_6 = arith.constant 1.000000e+00 : f32
    %9 = vector.broadcast %cst_6 : f32 to vector<8x128xf32>
    %10 = arith.subf %8, %9 : vector<8x128xf32>
    %cst_7 = arith.constant 1.67326319 : f32
    %11 = vector.broadcast %cst_7 : f32 to vector<8x128xf32>
    %12 = arith.mulf %11, %10 : vector<8x128xf32>
    %13 = arith.select %7, %5, %12 : vector<8x128xi1>, vector<8x128xf32>
    %cst_8 = arith.constant 1.05070102 : f32
    %14 = vector.broadcast %cst_8 : f32 to vector<8x128xf32>
    %15 = arith.mulf %14, %13 : vector<8x128xf32>
    %16 = arith.truncf %15 : vector<8x128xf32> to vector<8x128xbf16>
    %c0_9 = arith.constant 0 : index
    %c0_10 = arith.constant 0 : index
    %17 = vector.load %arg4[%c0_9, %c0_10] : memref<128x128xbf16, #tpu.memory_space<vmem>>, vector<128x128xbf16>
    %cst_11 = arith.constant dense<0.000000e+00> : vector<8x128xf32>
    %18 = tpu.matmul %16, %17, %cst_11 {dimension_numbers = #tpu.dot_dimension_numbers<[1], [0], [0], [1], [0, 0, 1, 1], [], []>} : vector<8x128xbf16>, vector<128x128xbf16>, vector<8x128xf32> -> vector<8x128xf32>
    %c0_12 = arith.constant 0 : index
    %c0_13 = arith.constant 0 : index
    %19 = vector.load %arg5[%c0_12, %c0_13] : memref<1x128xf32, #tpu.memory_space<vmem>>, vector<1x128xf32>
    %20 = vector.broadcast %19 : vector<1x128xf32> to vector<8x128xf32>
    %21 = arith.addf %18, %20 : vector<8x128xf32>
    %c0_14 = arith.constant 0 : index
    %c0_15 = arith.constant 0 : index
    %22 = vector.load %arg6[%c0_14, %c0_15] : memref<8x128xf32, #tpu.memory_space<vmem>>, vector<8x128xf32>
    tpu.vector_store %arg6[%c0_14, %c0_15], %21 {strides = array<i32>} : memref<8x128xf32, #tpu.memory_space<vmem>>, vector<8x128xf32>,
    return
  }
  func.func @transform_0(%arg0: i32) -> (i32, i32) {
    %c0_i32 = arith.constant 0 : i32
    %c0_i32_0 = arith.constant 0 : i32
    return %arg0, %c0_i32 : i32, i32
  }
  func.func @transform_1(%arg0: i32) -> (i32, i32) {
    %c0_i32 = arith.constant 0 : i32
    %c0_i32_0 = arith.constant 0 : i32
    %c0_i32_1 = arith.constant 0 : i32
    return %c0_i32, %c0_i32_0 : i32, i32
  }
  func.func @transform_2(%arg0: i32) -> (i32, i32) {
    %c0_i32 = arith.constant 0 : i32
    %c0_i32_0 = arith.constant 0 : i32
    %c0_i32_1 = arith.constant 0 : i32
    return %c0_i32, %c0_i32_0 : i32, i32
  }
  func.func @transform_3(%arg0: i32) -> (i32, i32) {
    %c0_i32 = arith.constant 0 : i32
    %c0_i32_0 = arith.constant 0 : i32
    %c0_i32_1 = arith.constant 0 : i32
    return %c0_i32, %c0_i32_0 : i32, i32
  }
  func.func @transform_4(%arg0: i32) -> (i32, i32) {
    %c0_i32 = arith.constant 0 : i32
    %c0_i32_0 = arith.constant 0 : i32
    %c0_i32_1 = arith.constant 0 : i32
    return %c0_i32, %c0_i32_0 : i32, i32
  }
  func.func @transform_5(%arg0: i32) -> (i32, i32) {
    %c0_i32 = arith.constant 0 : i32
    %c0_i32_0 = arith.constant 0 : i32
    return %arg0, %c0_i32 : i32, i32
  }
}

</mosaic_0001>

<bundles_post_ra>
// kernel: tpu_custom_call.1
= control target key start
LH: loop header
LB: loop body
LE: loop exit
PB: predicated region body
PF: predicated region fallthrough
CT: control target
= control target key end

     0   :  { %10 = vsyncpa [#allocation3], 0  ;;  %s604_s0 = inlined_call_operand.hbm [shape: bf16[8,128], index: 0, kind: input, shape index: {}]   ;;  %s605_s1 = inlined_call_operand.hbm [shape: bf16[128,128], index: 1, kind: input, shape index: {}]   ;;  %s606_s2 = inlined_call_operand.vmem [shape: f32[1,128], index: 2, kind: input, shape index: {}]   ;;  %s607_s3 = inlined_call_operand.hbm [shape: bf16[128,128], index: 3, kind: input, shape index: {}]   ;;  %s608_s4 = inlined_call_operand.vmem [shape: f32[1,128], index: 4, kind: input, shape index: {}]   ;;  %s609_s5 = inlined_call_operand.hbm [shape: f32[8,128], index: 5, kind: output, shape index: {}]  }
   0x1   :  { %11 = vsyncpa [#allocation6], 0 }
   0x2   :  { %12 = vsyncpa [#allocation4], 0  ;;  %s506_s18 = smov [#allocation5]   ;;  %s412_s22 = scalar_lea.hbm %s605_s1, 1024 }
   0x3   :  { %s28_s19 = sshll.u32 %s506_s18, 4  ;;  %p413_p0 = scmp.ne.s32.totalorder %s605_s1, %s412_s22  ;;  %s29_s19 = int_to_ptr.vmem [resolvable:$true] %s28_s19 }
   0x4   :  { %p416_p1 = scmp.lt.u32.totalorder %s412_s22, %s605_s1 }
   0x6   :  { %p418_p2 = pnand %p416_p1, %p413_p0 }
   0x8   :  { %421 = shalt.err (!%p418_p2)
}
   0x9   :  { %s422_s27 = scalar_lea.vmem %s29_s19, 1024  ;;  %p427_p4 = scmp.lt.s32.totalorder %s29_s19, %s29_s19 }
   0xa   :  { %p423_p3 = scmp.ne.s32.totalorder %s29_s19, %s422_s27  ;;  %p428_p5 = scmp.lt.s32.totalorder %s422_s27, %s422_s27 }
   0xc   :  { %p429_p6 = por %p428_p5, %p427_p4 }
   0xe   :  { %p430_p7 = pnand %p429_p6, %p423_p3 }
  0x10   :  { %433 = shalt.err (!%p430_p7)
}
  0x11   :  { %s507_s28 = smov 64   ;;  %s508_s29 = smov 4  }
  0x12   :  { %34 = dma.hbm_to_vmem [thread:$0]  %s605_s1, 1024, %s29_s19, [#allocation6], %s507_s28, %s507_s28, %s508_s29  }
  0x13   :  { %s509_s7 = smov [#allocation2]   ;;  %s510_s9 = smov [#allocation7]  }
  0x14   :  { %s19_s8 = sshll.u32 %s509_s7, 4  ;;  %s42_s10 = sshll.u32 %s510_s9, 4  ;;  %s20_s8 = int_to_ptr.vmem [resolvable:$true] %s19_s8  ;;  %s43_s10 = int_to_ptr.vmem [resolvable:$true] %s42_s10 }
  0x15   :  { %s434_s13 = scalar_lea.hbm %s604_s0, 64 }
  0x16   :  { %p435_p8 = scmp.ne.s32.totalorder %s604_s0, %s434_s13  ;;  %p438_p9 = scmp.lt.u32.totalorder %s434_s13, %s604_s0 }
  0x18   :  { %p440_p10 = pnand %p438_p9, %p435_p8 }
  0x1a   :  { %443 = shalt.err (!%p440_p10)
}
  0x1b   :  { %s444_s1 = scalar_lea.vmem %s20_s8, 64  ;;  %p449_p12 = scmp.lt.s32.totalorder %s20_s8, %s20_s8 }
  0x1c   :  { %p445_p11 = scmp.ne.s32.totalorder %s20_s8, %s444_s1  ;;  %p450_p13 = scmp.lt.s32.totalorder %s444_s1, %s444_s1 }
  0x1e   :  { %p451_p0 = por %p450_p13, %p449_p12 }
  0x20   :  { %p452_p1 = pnand %p451_p0, %p445_p11 }
  0x22   :  { %455 = shalt.err (!%p452_p1)
}
  0x23   :  { %22 = dma.hbm_to_vmem [thread:$0]  %s604_s0, 64, %s20_s8, [#allocation3]  }
  0x24   :  { %s456_s22 = scalar_lea.hbm %s607_s3, 1024 }
  0x25   :  { %p457_p2 = scmp.ne.s32.totalorder %s607_s3, %s456_s22  ;;  %p460_p3 = scmp.lt.u32.totalorder %s456_s22, %s607_s3 }
  0x27   :  { %p462_p4 = pnand %p460_p3, %p457_p2 }
  0x29   :  { %465 = shalt.err (!%p462_p4)
}
  0x2a   :  { %s466_s27 = scalar_lea.vmem %s43_s10, 1024  ;;  %p471_p6 = scmp.lt.s32.totalorder %s43_s10, %s43_s10 }
  0x2b   :  { %p467_p5 = scmp.ne.s32.totalorder %s43_s10, %s466_s27  ;;  %p472_p7 = scmp.lt.s32.totalorder %s466_s27, %s466_s27 }
  0x2d   :  { %p473_p8 = por %p472_p7, %p471_p6 }
  0x2f   :  { %p474_p9 = pnand %p473_p8, %p467_p5 }
  0x31   :  { %477 = shalt.err (!%p474_p9)
}
  0x32   :  { %48 = dma.hbm_to_vmem [thread:$0]  %s607_s3, 1024, %s43_s10, [#allocation6], %s507_s28, %s507_s28, %s508_s29  }
  0x33   :  { %500 = dma.done.wait [#allocation3], 64  }
  0x34   :  { %501 = vsyncadd [#allocation3], 4294967232 }
  0x35   :  { %502 = dma.done.wait [#allocation6], 2048  }
  0x36   :  { %503 = vsyncadd [#allocation6], 4294965248  ;;  %v511_v0 = vmov 0.0   ;;  %vm512_vm0 = vmmov 0   ;;  %v394_v1 = vld [vmem:[#allocation5] sm:$0xff]   ;;  %v395_v2 = vld [vmem:[#allocation5 + $0x8] sm:$0xff]  }
  0x37   :  { %346 = vmatprep.subr.bf16.mxu0 %v511_v0  ;;  %362 = vmatprep.mubr.msk.bf16.mxu0 %vm512_vm0, %v511_v0  ;;  %v396_v3 = vld [vmem:[#allocation5 + $0x10] sm:$0xff]   ;;  %v402_v4 = vld [vmem:[#allocation7] sm:$0xff]   ;;  %v397_v5 = vld [vmem:[#allocation5 + $0x18] sm:$0xff]  }
  0x38   :  { %366 = vmatprep.subr.bf16.mxu1 %v511_v0  ;;  %382 = vmatprep.mubr.msk.bf16.mxu1 %vm512_vm0, %v511_v0  ;;  %v403_v6 = vld [vmem:[#allocation7 + $0x8] sm:$0xff]   ;;  %v398_v7 = vld [vmem:[#allocation5 + $0x20] sm:$0xff]   ;;  %v400_v9 = vld [vmem:[#allocation5 + $0x30] sm:$0xff]  }
  0x39   :  { %347 = vmatpush3.bf16.msra.mxu0 %v394_v1  ;;  %367 = vmatpush3.bf16.msra.mxu1 %v402_v4  ;;  %v399_v8 = vld [vmem:[#allocation5 + $0x28] sm:$0xff]   ;;  %v401_v10 = vld [vmem:[#allocation5 + $0x38] sm:$0xff]   ;;  %v404_v12 = vld [vmem:[#allocation7 + $0x10] sm:$0xff]  }
  0x3a   :  { %348 = vmatprep.subr.bf16.mxu0 %v511_v0  ;;  %368 = vmatprep.subr.bf16.mxu1 %v511_v0  ;;  %v61_v11 = vld [vmem:[#allocation2] sm:$0xf]  ;;  %v406_v14 = vld [vmem:[#allocation7 + $0x20] sm:$0xff]   ;;  %v407_v15 = vld [vmem:[#allocation7 + $0x28] sm:$0xff]  }
  0x3b   :  { %v405_v13 = vld [vmem:[#allocation7 + $0x18] sm:$0xff]   ;;  %v408_v16 = vld [vmem:[#allocation7 + $0x30] sm:$0xff]  }
  0x3c   :  { %v409_v17 = vld [vmem:[#allocation7 + $0x38] sm:$0xff]  }
  0x3d   :  { %349 = vmatpush3.bf16.msra.mxu0 %v395_v2  ;;  %369 = vmatpush3.bf16.msra.mxu1 %v403_v6  ;;  %v309_v18 = vld [vmem:[%s606_s2] ss:$0 sm:$0xff]  ;;  %s513_s2 = smov [#allocation8]  }
  0x3e   :  { %350 = vmatprep.subr.bf16.mxu0 %v511_v0  ;;  %370 = vmatprep.subr.bf16.mxu1 %v511_v0  ;;  %v319_v31 = vld [vmem:[%s608_s4] ss:$0 sm:$0xff]  ;;  %s299_s7 = sshll.u32 %s513_s2, 4  ;;  %s300_s7 = int_to_ptr.vmem [resolvable:$true] %s299_s7 }
  0x3f   :  { %s478_s8 = scalar_lea.vmem %s300_s7, 128  ;;  %p483_p11 = scmp.lt.s32.totalorder %s300_s7, %s300_s7 }
  0x40   :  { %p479_p10 = scmp.ne.s32.totalorder %s300_s7, %s478_s8  ;;  %p484_p12 = scmp.lt.s32.totalorder %s478_s8, %s478_s8 }
  0x41   :  { %351 = vmatpush3.bf16.msra.mxu0 %v396_v3  ;;  %371 = vmatpush3.bf16.msra.mxu1 %v404_v12 }
  0x42   :  { %352 = vmatprep.subr.bf16.mxu0 %v511_v0  ;;  %372 = vmatprep.subr.bf16.mxu1 %v511_v0  ;;  %p485_p13 = por %p484_p12, %p483_p11 }
  0x44   :  { %p486_p0 = pnand %p485_p13, %p479_p10 }
  0x45   :  { %353 = vmatpush3.bf16.msra.mxu0 %v397_v5  ;;  %373 = vmatpush3.bf16.msra.mxu1 %v405_v13 }
  0x46   :  { %354 = vmatprep.subr.bf16.mxu0 %v511_v0  ;;  %374 = vmatprep.subr.bf16.mxu1 %v511_v0 }
  0x49   :  { %355 = vmatpush3.bf16.msra.mxu0 %v398_v7  ;;  %375 = vmatpush3.bf16.msra.mxu1 %v406_v14 }
  0x4a   :  { %356 = vmatprep.subr.bf16.mxu0 %v511_v0  ;;  %376 = vmatprep.subr.bf16.mxu1 %v511_v0 }
  0x4d   :  { %357 = vmatpush3.bf16.msra.mxu0 %v399_v8  ;;  %377 = vmatpush3.bf16.msra.mxu1 %v407_v15 }
  0x4e   :  { %358 = vmatprep.subr.bf16.mxu0 %v511_v0  ;;  %378 = vmatprep.subr.bf16.mxu1 %v511_v0 }
  0x51   :  { %359 = vmatpush3.bf16.msra.mxu0 %v400_v9  ;;  %379 = vmatpush3.bf16.msra.mxu1 %v408_v16 }
  0x52   :  { %360 = vmatprep.subr.bf16.mxu0 %v511_v0  ;;  %380 = vmatprep.subr.bf16.mxu1 %v511_v0 }
  0x55   :  { %361 = vmatpush3.bf16.msra.mxu0 %v401_v10  ;;  %381 = vmatpush3.bf16.msra.mxu1 %v409_v17 }
  0x58   :  { %363 = vmatmul.mubr.bf16.vlgmr.msra.gmra.mrb[0].mxu0 %v61_v11 }
 0x12b   :  { %v167_v19 = vpop.f32.mrb[0].mxu0 }
 0x12c   :  { %v168_v20 = vadd.f32 %v309_v18, %v167_v19  ;;  %v364_v21 = vpop.f32.mrb[1].mxu0 }
 0x12d   :  { %v170_v22 = vpop.f32.mrb[2].mxu0 }
 0x12e   :  { %v174_v23 = vmul.f32 1.442695, %v168_v20  ;;  %v365_v24 = vpop.f32.mrb[3].mxu0  ;;  %vm173_vm1 = vcmp.gt.f32.partialorder %v168_v20, 0.0 }
 0x130   :  { %410 = vpow2.f32 %v174_v23 }
 0x13a   :  { %v411_v25 = vpop.eup %410 }
 0x13b   :  { %v318_v26 = vadd.f32 -1.0, %v411_v25 }
 0x13d   :  { %v177_v27 = vmul.f32 1.6732632, %v318_v26 }
 0x13f   :  { %v178_v28 = vsel %vm173_vm1, %v168_v20, %v177_v27 }
 0x140   :  { %v179_v29 = vmul.f32 1.050701, %v178_v28 }
 0x142   :  { %v180_v30 = vpack.c.bf16 %v179_v29, %v179_v29 }
 0x144   :  { %383 = vmatmul.mubr.bf16.vlgmr.msra.gmra.mrb[0].mxu1 %v180_v30 }
 0x217   :  { %v286_v32 = vpop.f32.mrb[0].mxu1 }
 0x218   :  { %v287_v33 = vadd.f32 %v319_v31, %v286_v32  ;;  %v384_v34 = vpop.f32.mrb[1].mxu1 }
 0x219   :  { %v289_v35 = vpop.f32.mrb[2].mxu1 }
 0x21a   :  { %292 = vst [vmem:[#allocation8] sm:$0xff] %v287_v33  ;;  %v385_v36 = vpop.f32.mrb[3].mxu1 }
 0x21b   :  { %489 = shalt.err (!%p486_p0)
}
 0x21c   :  { %s490_s4 = scalar_lea.hbm %s609_s5, 128 }
 0x21d   :  { %p491_p1 = scmp.ne.s32.totalorder %s609_s5, %s490_s4  ;;  %p494_p2 = scmp.lt.u32.totalorder %s490_s4, %s609_s5 }
 0x21f   :  { %p496_p3 = pnand %p494_p2, %p491_p1 }
 0x221   :  { %499 = shalt.err (!%p496_p3)
}
 0x222   :  { %302 = dma.vmem_to_hbm [thread:$0]  %s300_s7, 128, %s609_s5, [#allocation4]  }
 0x223   :  { %504 = dma.done.wait [#allocation4], 128  }
 0x224   :  { %505 = vsyncadd [#allocation4], 4294967168 }
 0x225   :  { %306 = vsyncpa [#allocation3], 1 }
 0x226   :  { %307 = vsyncpa [#allocation6], 1 }
 0x227   :  { %308 = vsyncpa [#allocation4], 1 }

</bundles_post_ra>
